<compile_context>
chip_gen: v5e
topology: v5e:2x2
jax: 0.10.0
libtpu: 0.0.40
codegen_flags: <defaults>
</compile_context>

<pallas_src>
import functools

import jax
import jax.numpy as jnp
from jax.experimental import pallas as pl
from jax.experimental.pallas import tpu as pltpu


# --------------------------------------------------------------------------
# Stage 1: hoisted K / V projection (1x1 convs as channel matmuls)
# --------------------------------------------------------------------------
def kv_proj_kernel(x_ref, wk_ref, bk_ref, wv_ref, bv_ref, kt_ref, v_ref):
    """One (batch, pixel-tile) step: emit K^T (TP, C/2) bf16 and V (C, TP) bf16.

    x tile is channel-major (C, TP) with pixels on lanes.  K is written
    pre-transposed (pixels on sublanes) so the attention kernel's energy matmul
    needs no per-step transpose; the single (C/2, TP) -> (TP, C/2) transpose
    here happens once per pixel, not once per (query-tile, key-tile) step.
    """
    xb = x_ref[0].astype(jnp.bfloat16)                                  # (C, TP)
    k = jnp.dot(wk_ref[...], xb,
                preferred_element_type=jnp.float32) + bk_ref[...]       # (C/2, TP) f32
    v = jnp.dot(wv_ref[...], xb,
                preferred_element_type=jnp.float32) + bv_ref[...]       # (C,   TP) f32
    kt_ref[0] = k.T.astype(jnp.bfloat16)                                # (TP, C/2)
    v_ref[0] = v.astype(jnp.bfloat16)                                   # (C, TP)


# --------------------------------------------------------------------------
# Stage 2: attention with K^T / V VMEM-resident per batch element
# --------------------------------------------------------------------------
def attn_kernel(x_ref, wq_ref, bq_ref, kt_ref, v_ref, gamma_ref, out_ref, *,
                n_true, n_pad):
    """One (batch b, query-tile i) step with the full key axis resident.

    x tile   : (C, TQ)      f32  (queries on lanes; also the residual)
    kt block : (N_pad, C/2) bf16 resident per b (keys on sublanes)
    v block  : (C, N_pad)   bf16 resident per b (keys on lanes)
    """
    xq = x_ref[0]                                                       # (C, TQ) f32

    # Q projection for this query tile (non-redundant: once per query pixel).
    q = jnp.dot(wq_ref[...], xq.astype(jnp.bfloat16),
                preferred_element_type=jnp.float32) + bq_ref[...]       # (C/2, TQ) f32
    qb = q.astype(jnp.bfloat16)

    # Energy with keys on sublanes, queries on lanes: one plain MXU matmul.
    s = jnp.dot(kt_ref[0], qb, preferred_element_type=jnp.float32)      # (N_pad, TQ)

    if n_pad > n_true:  # static: mask zero-padded key rows before the softmax
        kpos = jax.lax.broadcasted_iota(jnp.int32, (n_pad, 1), 0)       # (N_pad, 1)
        s = jnp.where(kpos < n_true, s, jnp.float32(-1e30))

    # Softmax over the key axis (axis 0); stats stay f32 and lane-dense.
    m = jnp.max(s, axis=0, keepdims=True)                               # (1, TQ)
    p = jnp.exp(s - m)                                                  # (N_pad, TQ)
    l = jnp.sum(p, axis=0, keepdims=True)                               # (1, TQ)

    o = jnp.dot(v_ref[0], p.astype(jnp.bfloat16),
                preferred_element_type=jnp.float32)                     # (C, TQ) f32
    inv_l = pl.reciprocal(l, approx=False)                              # exact
    out_ref[0] = gamma_ref[0] * (o * inv_l) + xq


# --------------------------------------------------------------------------
# Wrapper
# --------------------------------------------------------------------------
def _round_up(n, m):
    return ((n + m - 1) // m) * m


def _pick_pixel_tile(n_pad):
    for t in (512, 256, 128):
        if t <= n_pad and n_pad % t == 0:
            return t
    return n_pad


def _pick_query_tile(n_pad, energy_budget_bytes=8 << 20):
    # Grow TQ to 256 when the (N_pad, TQ) f32 energy slab stays small.
    tq = 256 if (n_pad % 256 == 0 and n_pad * 256 * 4 <= energy_budget_bytes) else 128
    return min(tq, n_pad)


def self_attn(x_nchw, wq_conv, bq, wk_conv, bk, wv_conv, bv, gamma):
    """Forward pass of Self_Attn: gamma * attention(x) + x, shape (B, C, W, H)."""
    B, C, W, H = x_nchw.shape
    N = W * H
    Ch = C // 2
    N_pad = _round_up(N, 128)

    # Channel-major (B, C, N): a free reshape of NCHW (pixel axis on lanes).
    x_bcn = x_nchw.reshape(B, C, N).astype(jnp.float32)
    if N_pad != N:
        x_bcn = jnp.pad(x_bcn, ((0, 0), (0, 0), (0, N_pad - N)))

    # 1x1 convs == channel matmuls; weights as bf16 MXU operands, f32 biases.
    wq = wq_conv.reshape(Ch, C).astype(jnp.bfloat16)
    wk = wk_conv.reshape(Ch, C).astype(jnp.bfloat16)
    wv = wv_conv.reshape(C, C).astype(jnp.bfloat16)
    bq2 = bq.reshape(Ch, 1).astype(jnp.float32)
    bk2 = bk.reshape(Ch, 1).astype(jnp.float32)
    bv2 = bv.reshape(C, 1).astype(jnp.float32)
    gamma1 = gamma.reshape(1).astype(jnp.float32)

    # ---- stage 1: hoisted K / V projection (once per pixel, bf16 outputs) ----
    TP = _pick_pixel_tile(N_pad)
    kt, v = pl.pallas_call(
        kv_proj_kernel,
        out_shape=(jax.ShapeDtypeStruct((B, N_pad, Ch), jnp.bfloat16),
                   jax.ShapeDtypeStruct((B, C, N_pad), jnp.bfloat16)),
        grid_spec=pltpu.PrefetchScalarGridSpec(
            num_scalar_prefetch=0,
            grid=(B, N_pad // TP),
            in_specs=[
                pl.BlockSpec((1, C, TP), lambda b, t: (b, 0, t)),      # x tile
                pl.BlockSpec((Ch, C), lambda b, t: (0, 0)),            # Wk
                pl.BlockSpec((Ch, 1), lambda b, t: (0, 0)),            # bk
                pl.BlockSpec((C, C), lambda b, t: (0, 0)),             # Wv
                pl.BlockSpec((C, 1), lambda b, t: (0, 0)),             # bv
            ],
            out_specs=[
                pl.BlockSpec((1, TP, Ch), lambda b, t: (b, t, 0)),     # K^T
                pl.BlockSpec((1, C, TP), lambda b, t: (b, 0, t)),      # V
            ],
        ),
        compiler_params=pltpu.CompilerParams(
            dimension_semantics=("parallel", "parallel")),
    )(x_bcn, wk, bk2, wv, bv2)

    # ---- stage 2: attention with resident K^T / V and 256-wide query tiles ----
    TQ = _pick_query_tile(N_pad)
    est_vmem = (
        2 * 2 * (N_pad * Ch + C * N_pad)       # double-buffered bf16 K^T + V
        + 2 * (2 * C * TQ * 4)                 # f32 x-in + out tiles (double buffer)
        + 3 * N_pad * TQ * 4                   # energy / prob f32 intermediates
        + 4 * (Ch * C + C * C + 2 * C))        # weights + biases
    # Explicit budget with headroom; capped so it also fits v7x's 64 MiB VMEM.
    vmem_limit = int(min(64 * (1 << 20), max(32 * (1 << 20), 2 * est_vmem)))

    out_bcn = pl.pallas_call(
        functools.partial(attn_kernel, n_true=N, n_pad=N_pad),
        out_shape=jax.ShapeDtypeStruct((B, C, N_pad), jnp.float32),
        grid_spec=pltpu.PrefetchScalarGridSpec(
            num_scalar_prefetch=0,
            grid=(B, N_pad // TQ),
            in_specs=[
                pl.BlockSpec((1, C, TQ), lambda b, i: (b, 0, i)),       # x (query + residual)
                pl.BlockSpec((Ch, C), lambda b, i: (0, 0)),             # Wq
                pl.BlockSpec((Ch, 1), lambda b, i: (0, 0)),             # bq
                pl.BlockSpec((1, N_pad, Ch), lambda b, i: (b, 0, 0)),   # K^T (resident per b)
                pl.BlockSpec((1, C, N_pad), lambda b, i: (b, 0, 0)),    # V   (resident per b)
                pl.BlockSpec(memory_space=pltpu.MemorySpace.SMEM),      # gamma scalar
            ],
            out_specs=pl.BlockSpec((1, C, TQ), lambda b, i: (b, 0, i)),
        ),
        compiler_params=pltpu.CompilerParams(
            dimension_semantics=("parallel", "parallel"),
            vmem_limit_bytes=vmem_limit),
    )(x_bcn, wq, bq2, kt, v, gamma1)

    out = out_bcn[:, :, :N] if N_pad != N else out_bcn
    return out.reshape(B, C, W, H)


# --------------------------------------------------------------------------
# References
# --------------------------------------------------------------------------
def self_attn_reference_f32(x_nchw, wq_conv, bq, wk_conv, bk, wv_conv, bv, gamma):
    """Pure-JAX f32 mirror of the PyTorch forward (bmm formulation)."""
    B, C, W, H = x_nchw.shape
    N = W * H
    Ch = C // 2
    xf = x_nchw.reshape(B, C, N)
    q = jnp.einsum('oc,bcn->bon', wq_conv.reshape(Ch, C), xf) + bq[None, :, None]
    k = jnp.einsum('oc,bcn->bon', wk_conv.reshape(Ch, C), xf) + bk[None, :, None]
    v = jnp.einsum('oc,bcn->bon', wv_conv.reshape(C, C), xf) + bv[None, :, None]
    proj_query = jnp.transpose(q, (0, 2, 1))                        # (B, N, C/2)
    energy = jnp.einsum('bnc,bcm->bnm', proj_query, k)              # (B, N, N)
    attention = jax.nn.softmax(energy, axis=-1)
    out = jnp.einsum('bcn,bmn->bcm', v, attention)                  # bmm(V, A^T)
    return gamma[0] * out.reshape(B, C, W, H) + x_nchw


def self_attn_reference_bf16(x_nchw, wq_conv, bq, wk_conv, bk, wv_conv, bv, gamma):
    """Reference mirroring the kernel's precision policy (bf16 MXU operands,
    f32 accumulation, f32 softmax)."""
    B, C, W, H = x_nchw.shape
    N = W * H
    Ch = C // 2
    f32 = jnp.float32
    x = x_nchw.reshape(B, C, N).astype(f32)
    xb = x.astype(jnp.bfloat16)
    q = jnp.einsum('oc,bcn->bon', wq_conv.reshape(Ch, C).astype(jnp.bfloat16), xb,
                   preferred_element_type=f32) + bq[None, :, None]
    k = jnp.einsum('oc,bcn->bon', wk_conv.reshape(Ch, C).astype(jnp.bfloat16), xb,
                   preferred_element_type=f32) + bk[None, :, None]
    v = jnp.einsum('oc,bcn->bon', wv_conv.reshape(C, C).astype(jnp.bfloat16), xb,
                   preferred_element_type=f32) + bv[None, :, None]
    energy = jnp.einsum('bcn,bcm->bnm', q.astype(jnp.bfloat16), k.astype(jnp.bfloat16),
                        preferred_element_type=f32)                 # (B, Nq, Nk)
    m = jnp.max(energy, axis=-1, keepdims=True)
    p = jnp.exp(energy - m)
    l = jnp.sum(p, axis=-1, keepdims=True)                          # (B, Nq, 1)
    o_un = jnp.einsum('bcm,bnm->bcn', v.astype(jnp.bfloat16), p.astype(jnp.bfloat16),
                      preferred_element_type=f32)                   # (B, C, Nq)
    o = o_un / jnp.transpose(l, (0, 2, 1))
    return (gamma[0] * o + x).reshape(B, C, W, H)


# TODO(synk): the PyTorch module's `monitor`/`self.map` attribute capture is a
# stateful side-effect outside the returned tensor and is not reproduced here.

if __name__ == "__main__":
    def _run_case(W, H):
        B, C = 2, 4
        key = jax.random.PRNGKey(0)
        ks = jax.random.split(key, 7)
        x = jax.random.normal(ks[0], (B, C, W, H), jnp.float32)
        wq_conv = 0.3 * jax.random.normal(ks[1], (C // 2, C, 1, 1), jnp.float32)
        bq = 0.1 * jax.random.normal(ks[2], (C // 2,), jnp.float32)
        wk_conv = 0.3 * jax.random.normal(ks[3], (C // 2, C, 1, 1), jnp.float32)
        bk = 0.1 * jax.random.normal(ks[4], (C // 2,), jnp.float32)
        wv_conv = 0.3 * jax.random.normal(ks[5], (C, C, 1, 1), jnp.float32)
        bv = 0.1 * jax.random.normal(ks[6], (C,), jnp.float32)
        # the module initializes gamma to 0 (out == x); use a nonzero value so
        # the attention path is exercised numerically.
        gamma = jnp.array([0.5], jnp.float32)

        out = self_attn(x, wq_conv, bq, wk_conv, bk, wv_conv, bv, gamma)
        jax.block_until_ready(out)
        assert out.shape == (B, C, W, H)

        ref_bf16 = self_attn_reference_bf16(x, wq_conv, bq, wk_conv, bk, wv_conv, bv, gamma)
        ref_f32 = self_attn_reference_f32(x, wq_conv, bq, wk_conv, bk, wv_conv, bv, gamma)
        assert jnp.allclose(out, ref_bf16, atol=2e-2, rtol=2e-2), \
            f"mismatch vs bf16-matched reference at spatial ({W},{H})"
        assert jnp.allclose(out, ref_f32, atol=6e-2, rtol=6e-2), \
            f"mismatch vs f32 reference at spatial ({W},{H})"

    _run_case(16, 16)   # N = 256: multiple-of-128 path, no padding
    _run_case(12, 12)   # N = 144: pad-to-128 + key-masking path
    print("KERNEL_OK")
</pallas_src>

<mosaic_0001>
module attributes {stable_mosaic.version = 11 : i64} {
  func.func @kv_proj_kernel(%arg0: i32, %arg1: i32, %arg2: memref<1x4x256xf32, #tpu.memory_space<vmem>>, %arg3: memref<2x4xbf16, #tpu.memory_space<vmem>>, %arg4: memref<2x1xf32, #tpu.memory_space<vmem>>, %arg5: memref<4x4xbf16, #tpu.memory_space<vmem>>, %arg6: memref<4x1xf32, #tpu.memory_space<vmem>>, %arg7: memref<1x256x2xbf16, #tpu.memory_space<vmem>>, %arg8: memref<1x4x256xbf16, #tpu.memory_space<vmem>>) attributes {dimension_semantics = [#tpu.dimension_semantics<parallel>, #tpu.dimension_semantics<parallel>], iteration_bounds = array<i64: 2, 1>, scalar_prefetch = 0 : i64, scratch_operands = 0 : i64, tpu.core_type = #tpu.core_type<tc>, window_params = [{transform_indices = @transform_0, window_bounds = array<i64: 1, 4, 256>}, {pipeline_mode = #tpu.pipeline_mode<synchronous>, transform_indices = @transform_1, window_bounds = array<i64: 2, 4>}, {pipeline_mode = #tpu.pipeline_mode<synchronous>, transform_indices = @transform_2, window_bounds = array<i64: 2, 1>}, {pipeline_mode = #tpu.pipeline_mode<synchronous>, transform_indices = @transform_3, window_bounds = array<i64: 4, 4>}, {pipeline_mode = #tpu.pipeline_mode<synchronous>, transform_indices = @transform_4, window_bounds = array<i64: 4, 1>}, {transform_indices = @transform_5, window_bounds = array<i64: 1, 256, 2>}, {transform_indices = @transform_6, window_bounds = array<i64: 1, 4, 256>}]} {
    %c0 = arith.constant 0 : index
    %c0_0 = arith.constant 0 : index
    %c0_1 = arith.constant 0 : index
    %0 = vector.load %arg2[%c0, %c0_0, %c0_1] : memref<1x4x256xf32, #tpu.memory_space<vmem>>, vector<1x4x256xf32>
    %1 = vector.shape_cast %0 : vector<1x4x256xf32> to vector<4x256xf32>
    %2 = arith.truncf %1 : vector<4x256xf32> to vector<4x256xbf16>
    %c0_2 = arith.constant 0 : index
    %c0_3 = arith.constant 0 : index
    %3 = vector.load %arg3[%c0_2, %c0_3] : memref<2x4xbf16, #tpu.memory_space<vmem>>, vector<2x4xbf16>
    %cst = arith.constant dense<0.000000e+00> : vector<2x256xf32>
    %4 = tpu.matmul %3, %2, %cst {dimension_numbers = #tpu.dot_dimension_numbers<[1], [0], [0], [1], [0, 0, 1, 1], [], []>} : vector<2x4xbf16>, vector<4x256xbf16>, vector<2x256xf32> -> vector<2x256xf32>
    %c0_4 = arith.constant 0 : index
    %c0_5 = arith.constant 0 : index
    %5 = vector.load %arg4[%c0_4, %c0_5] : memref<2x1xf32, #tpu.memory_space<vmem>>, vector<2x1xf32>
    %6 = vector.broadcast %5 : vector<2x1xf32> to vector<2x256xf32>
    %7 = arith.addf %4, %6 : vector<2x256xf32>
    %c0_6 = arith.constant 0 : index
    %c0_7 = arith.constant 0 : index
    %8 = vector.load %arg5[%c0_6, %c0_7] : memref<4x4xbf16, #tpu.memory_space<vmem>>, vector<4x4xbf16>
    %cst_8 = arith.constant dense<0.000000e+00> : vector<4x256xf32>
    %9 = tpu.matmul %8, %2, %cst_8 {dimension_numbers = #tpu.dot_dimension_numbers<[1], [0], [0], [1], [0, 0, 1, 1], [], []>} : vector<4x4xbf16>, vector<4x256xbf16>, vector<4x256xf32> -> vector<4x256xf32>
    %c0_9 = arith.constant 0 : index
    %c0_10 = arith.constant 0 : index
    %10 = vector.load %arg6[%c0_9, %c0_10] : memref<4x1xf32, #tpu.memory_space<vmem>>, vector<4x1xf32>
    %11 = vector.broadcast %10 : vector<4x1xf32> to vector<4x256xf32>
    %12 = arith.addf %9, %11 : vector<4x256xf32>
    %13 = tpu.transpose %7, [1, 0] : vector<2x256xf32> -> vector<256x2xf32>
    %14 = arith.truncf %13 : vector<256x2xf32> to vector<256x2xbf16>
    %c0_11 = arith.constant 0 : index
    %c0_12 = arith.constant 0 : index
    %c0_13 = arith.constant 0 : index
    %15 = vector.load %arg7[%c0_11, %c0_12, %c0_13] : memref<1x256x2xbf16, #tpu.memory_space<vmem>>, vector<1x256x2xbf16>
    %16 = vector.shape_cast %15 : vector<1x256x2xbf16> to vector<256x2xbf16>
    %17 = vector.shape_cast %14 : vector<256x2xbf16> to vector<1x256x2xbf16>
    tpu.vector_store %arg7[%c0_11, %c0_12, %c0_13], %17 {strides = array<i32>} : memref<1x256x2xbf16, #tpu.memory_space<vmem>>, vector<1x256x2xbf16>,
    %18 = arith.truncf %12 : vector<4x256xf32> to vector<4x256xbf16>
    %c0_14 = arith.constant 0 : index
    %c0_15 = arith.constant 0 : index
    %c0_16 = arith.constant 0 : index
    %19 = vector.load %arg8[%c0_14, %c0_15, %c0_16] : memref<1x4x256xbf16, #tpu.memory_space<vmem>>, vector<1x4x256xbf16>
    %20 = vector.shape_cast %19 : vector<1x4x256xbf16> to vector<4x256xbf16>
    %21 = vector.shape_cast %18 : vector<4x256xbf16> to vector<1x4x256xbf16>
    tpu.vector_store %arg8[%c0_14, %c0_15, %c0_16], %21 {strides = array<i32>} : memref<1x4x256xbf16, #tpu.memory_space<vmem>>, vector<1x4x256xbf16>,
    return
  }
  func.func @transform_0(%arg0: i32, %arg1: i32) -> (i32, i32, i32) {
    %c0_i32 = arith.constant 0 : i32
    %c0_i32_0 = arith.constant 0 : i32
    return %arg0, %c0_i32, %arg1 : i32, i32, i32
  }
  func.func @transform_1(%arg0: i32, %arg1: i32) -> (i32, i32) {
    %c0_i32 = arith.constant 0 : i32
    %c0_i32_0 = arith.constant 0 : i32
    %c0_i32_1 = arith.constant 0 : i32
    return %c0_i32, %c0_i32_0 : i32, i32
  }
  func.func @transform_2(%arg0: i32, %arg1: i32) -> (i32, i32) {
    %c0_i32 = arith.constant 0 : i32
    %c0_i32_0 = arith.constant 0 : i32
    %c0_i32_1 = arith.constant 0 : i32
    return %c0_i32, %c0_i32_0 : i32, i32
  }
  func.func @transform_3(%arg0: i32, %arg1: i32) -> (i32, i32) {
    %c0_i32 = arith.constant 0 : i32
    %c0_i32_0 = arith.constant 0 : i32
    %c0_i32_1 = arith.constant 0 : i32
    return %c0_i32, %c0_i32_0 : i32, i32
  }
  func.func @transform_4(%arg0: i32, %arg1: i32) -> (i32, i32) {
    %c0_i32 = arith.constant 0 : i32
    %c0_i32_0 = arith.constant 0 : i32
    %c0_i32_1 = arith.constant 0 : i32
    return %c0_i32, %c0_i32_0 : i32, i32
  }
  func.func @transform_5(%arg0: i32, %arg1: i32) -> (i32, i32, i32) {
    %c0_i32 = arith.constant 0 : i32
    %c0_i32_0 = arith.constant 0 : i32
    return %arg0, %arg1, %c0_i32 : i32, i32, i32
  }
  func.func @transform_6(%arg0: i32, %arg1: i32) -> (i32, i32, i32) {
    %c0_i32 = arith.constant 0 : i32
    %c0_i32_0 = arith.constant 0 : i32
    return %arg0, %c0_i32, %arg1 : i32, i32, i32
  }
}

</mosaic_0001>

<bundles_post_ra>
// kernel: tpu_custom_call.1
= control target key start
LH: loop header
LB: loop body
LE: loop exit
PB: predicated region body
PF: predicated region fallthrough
CT: control target
= control target key end

     0   :  { %12 = vsyncpa [#allocation3], 0  ;;  %s1223_s0 = inlined_call_operand.hbm [shape: f32[2,4,256], index: 0, kind: input, shape index: {}]   ;;  %s1224_s1 = inlined_call_operand.vmem [shape: bf16[2,4], index: 1, kind: input, shape index: {}]   ;;  %s1225_s2 = inlined_call_operand.vmem [shape: f32[2,1], index: 2, kind: input, shape index: {}]   ;;  %s1226_s3 = inlined_call_operand.vmem [shape: bf16[4,4], index: 3, kind: input, shape index: {}]   ;;  %s1227_s4 = inlined_call_operand.vmem [shape: f32[4,1], index: 4, kind: input, shape index: {}]   ;;  %s1228_s5 = inlined_call_operand.vmem [shape: bf16[2,256,2], index: 5, kind: output, shape index: {0}]   ;;  %s1229_s6 = inlined_call_operand.hbm [shape: bf16[2,4,256], index: 6, kind: output, shape index: {1}]  }
   0x1   :  { %14 = vsyncpa [#allocation3 + $0x1], 0 }
   0x2   :  { %15 = vsyncpa [#allocation4], 0 }
   0x3   :  { %17 = vsyncpa [#allocation4 + $0x1], 0  ;;  %s1016_s21 = smov 0   ;;  %s1018_s22 = smov 0  }
   0x4   :  { %s1020_s23 = smov 0   ;;  %s1022_s24 = smov 0  }
   0x5   :  { %s1024_s25 = smov 0   ;;  %s1026_s26 = smov 0  }
   0x6 LB: > { %s694_s27 = sadd.s32 4294967295, %s978_s26   ;;  %s695_s28 = sadd.s32 4294967294, %s978_s26   ;;  %s978_s26 = sphi %s1026_s26, %s23_s26   ;;  %s974_s25 = sphi %s1024_s25, %s1238_s25   ;;  %s970_s24 = sphi %s1022_s24, %s1237_s24   ;;  %s966_s23 = sphi %s1020_s23, %s1236_s23   ;;  %s962_s22 = sphi %s1018_s22, %s1235_s22   ;;  %s958_s21 = sphi %s1016_s21, %s1234_s21  }
   0x7   : > { %s35_s29 = sadd.s32 1, %s974_s25  ;;  %s44_s30 = sadd.s32 1, %s966_s23 }
   0x8   : > { %p37_p0 = scmp.ge.s32.totalorder %s35_s29, 2  ;;  %p51_p1 = scmp.ne.s32.totalorder %s966_s23, %s962_s22 }
   0x9   : > { %p52_p2 = scmp.eq.s32.totalorder %s978_s26, 0  ;;  %p57_p3 = scmp.ne.s32.totalorder %s962_s22, %s958_s21 }
   0xa   : > { %s1240_s29 = smov (%p37_p0, %s35_s29), 0  ;;  %p58_p5 = scmp.eq.s32.totalorder %s694_s27, 0 }
   0xb   : > { %p1057_p4 = por %p52_p2, %p51_p1  ;;  %s39_s8 = ssub.s32 %s974_s25, %s1240_s29 }
   0xc   : > { %p195_p6 = scmp.eq.s32.totalorder %s694_s27, 1  ;;  %p42_p7 = scmp.eq.s32.totalorder %s39_s8, 0 }
   0xd   : > { %p1063_p8 = por %p58_p5, %p57_p3  ;;  %p201_p10 = scmp.eq.s32.totalorder %s695_s28, 1 }
   0xe   : > { %p1067_p9 = por %p195_p6, %p51_p1  ;;  %p697_p12 = scmp.ge.s32.totalorder %s978_s26, 2 }
   0xf   : > { %s1072_s11 = scalar_select %p42_p7, %s966_s23, %s44_s30  }
  0x10   : > { %p1074_p11 = por %p201_p10, %p57_p3  ;;  %p730_p13 = scmp.lt.s32.totalorder %s978_s26, 2 }
  0x11   : > { %s233_s13 = sand.u32 1, %s966_s23   ;;  %s715_s15 = sshll.u32 %s974_s25, 3 }
  0x12   : > { %s698_s14 = sshll.u32 %s233_s13, 3  ;;  %s244_s18 = scalar_lea.hbm %s1223_s0, %s715_s15 }
  0x13   : > { %s237_s19 = scalar_lea.vmem [#allocation2], %s698_s14  ;;  %s246_s27 = sshll.u32 %s244_s18, 4  ;;  %s247_s27 = int_to_ptr.hbm [resolvable:$true] %s246_s27 }
  0x14   : > { %s248_s20 = sshll.u32 %s237_s19, 4  ;;  %p723_p0 = pnand %p730_p13, %p1057_p4  ;;  %s249_s20 = int_to_ptr.vmem [resolvable:$true] %s248_s20 }
  0x15   : > { %p701_p1 = scmp.ge.s32.totalorder %s978_s26, 1  ;;  %p253_p2 = scmp.lt.s32.totalorder %s978_s26, 3 }
  0x16   : > { %s234_s28 = scalar_lea.sflag [#allocation3], %s233_s13 }
  0x17   : > { %725 = dma.hbm_to_vmem [thread:$0]  (!%p723_p0), %s247_s27, 128, %s249_s20, %s234_s28  }
  0x18   : > { %p254_p3 = pnand %p701_p1, %p253_p2 }
  0x19   : > { %s1090_s30 = sand.u32 (!%p254_p3), 1, %s962_s22  }
  0x1a   : > { %257 = sbr.rel (%p254_p3) target bundleno = 468 (0x1d4), region = 40  ;;  %s702_s8 = sshll.u32 (!%p254_p3), %s1090_s30, 3 }
  0x1b   : > { %s260_s14 = scalar_lea.sflag (!%p254_p3), [#allocation3], %s1090_s30  ;;  %s263_s15 = scalar_lea.vmem (!%p254_p3), [#allocation2], %s702_s8 }
  0x1f   : > { %949 = dma.done.wait (%p1063_p8), %s260_s14, 128  }
  0x20   : > { %951 = vsyncadd (%p1063_p8), %s260_s14, 4294967168  ;;  %v980_v0 = vmov 0   ;;  %v315_v1 = vld [vmem:[%s263_s15] sm:$0xff]  ;;  %v325_v2 = vld [vmem:[%s1225_s2] sm:$0x3]  ;;  %vm335_vm0 = vcmask 1041408  }
  0x21   : > { %782 = vset.pattern.permute.xlu0 %v980_v0  ;;  %865 = vset.pattern.permute.xlu1 %v980_v0  ;;  %317 = vst [vmem:[#allocation1] ss:$2 sm:$0xff] %v315_v1  ;;  %v324_v9 = vld [vmem:[%s1224_s1] sm:$0x1]  ;;  %vm331_vm1 = vcmask 31744   ;;  %p304_p4 = scmp.lt.s32.totalorder %s970_s24, 1 }
  0x22   : > { %328 = vperm.xlu0 %782, %v325_v2   ;;  %v368_v10 = vld [vmem:[%s1226_s3] sm:$0x3]  ;;  %vm500_vm2 = vcmask 11264   ;;  %s703_s7 = sshll.u32 %s1090_s30, 2  ;;  %s717_s13 = sshll.u32 %s970_s24, 2 }
  0x23   : > { %v369_v11 = vld [vmem:[%s1227_s4] sm:$0xf]  ;;  %s305_s27 = scalar_select %p304_p4, %s970_s24, 1 }
  0x24   : > { %372 = vperm.xlu1 %865, %v369_v11   ;;  %s568_s17 = scalar_lea.hbm %s1229_s6, %s717_s13  ;;  %s301_s24 = scalar_lea.vmem [#allocation5], %s703_s7 }
  0x25   : > { %s716_s28 = sshll.u32 %s305_s27, 7  ;;  %s570_s18 = sshll.u32 %s301_s24, 4  ;;  %s571_s18 = int_to_ptr.vmem [resolvable:$true] %s570_s18 }
  0x26   : > { %s1117_s15 = scalar_lea.vmem %s1228_s5, %s716_s28  ;;  %s572_s19 = sshll.u32 %s568_s17, 4  ;;  %s573_s19 = int_to_ptr.hbm [resolvable:$true] %s572_s19 }
  0x27   : > { %s551_s20 = scalar_lea.sflag [#allocation4], %s1090_s30  ;;  %s910_s27 = sshra.s32 %s573_s19, 4  ;;  %s911_s27 = int_to_ptr.hbm [resolvable:$true] %s910_s27 }
  0x28   : > { %v318_v3 = vld.sshfl [vmem:[#allocation1] sm:$0xff pattern:$0x75316420]  ;;  %v319_v4 = vld.sshfl [vmem:[#allocation1 + $0x8] sm:$0xff pattern:$0x75316420]  ;;  %p917_p8 = scmp.lt.s32.totalorder %s911_s27, %s1229_s6 }
  0x29   : > { %v322_v5 = vpack.c.bf16 %v318_v3, %v318_v3  ;;  %v323_v6 = vpack.c.bf16 %v319_v4, %v319_v4  ;;  %s912_s28 = scalar_lea.hbm %s911_s27, 4  ;;  %s916_s7 = scalar_lea.hbm %s1229_s6, 8 }
  0x2a   : > { %p913_p5 = scmp.ne.s32.totalorder %s911_s27, %s912_s28  ;;  %p918_p10 = scmp.lt.s32.totalorder %s916_s7, %s912_s28 }
  0x2b   : > { %v337_v7 = vsel %vm335_vm0, %v322_v5, 0  ;;  %v340_v8 = vsel %vm335_vm0, %v323_v6, 0 }
  0x2c   : > { %349 = vmatpush.bf16.msra.mxu0 %v337_v7  ;;  %362 = vmatpush.bf16.msra.mxu1 %v340_v8  ;;  %p914_p6 = pnand %p913_p5, %p1067_p9  ;;  %p919_p13 = por %p918_p10, %p917_p8 }
  0x2d   : > { %385 = vmatpush.bf16.msra.mxu2 %v337_v7  ;;  %398 = vmatpush.bf16.msra.mxu3 %v340_v8 }
  0x2e   : > { %p915_p7 = pneg %p914_p6 }
  0x2f   : > { %706 = vmatmul.msk.bf16.vlgmr.msra.gmra.mxu0 %vm331_vm1, %v324_v9  ;;  %707 = vmatmul.msk.bf16.vlgmr.msra.gmra.mxu1 %vm331_vm1, %v324_v9 }
  0x30   : > { %708 = vmatmul.msk.bf16.vlgmr.msra.gmra.mxu2 %vm331_vm1, %v368_v10  ;;  %709 = vmatmul.msk.bf16.vlgmr.msra.gmra.mxu3 %vm331_vm1, %v368_v10  ;;  %p920_p0 = pnand %p919_p13, %p915_p7 }
  0x94   : > { %v329_v12 = vpop.permute.xlu0 %328 }
  0xac   : > { %v351_v13 = vpop.f32.mrf.mxu0  ;;  %v364_v14 = vpop.f32.mrf.mxu1 }
  0xad   : > { %v352_v15 = vadd.f32 %v351_v13, %v329_v12  ;;  %v365_v16 = vadd.f32 %v364_v14, %v329_v12  ;;  %v373_v13 = vpop.permute.xlu1 %372 }
  0xaf   : > { %v783_v17 = vpack.i.bf16 %v365_v16, %v352_v15 }
  0xb1   : > { %784 = vxpose.xlu0.b32.start.end [1/1] (short) %v783_v17, 128 }
  0xb3   : > { %v387_v6 = vpop.f32.mrf.mxu2  ;;  %v400_v7 = vpop.f32.mrf.mxu3 }
  0xb4   : > { %v353_v18 = vpop.f32.mrf.mxu0  ;;  %v366_v19 = vpop.f32.mrf.mxu1  ;;  %v388_v14 = vadd.f32 %v387_v6, %v373_v13  ;;  %v401_v15 = vadd.f32 %v400_v7, %v373_v13 }
  0xb6   : > { %v533_v18 = vpack.c.bf16 %v401_v15, %v388_v14 }
  0xbb   : > { %v389_v16 = vpop.f32.mrf.mxu2  ;;  %v402_v17 = vpop.f32.mrf.mxu3 }
 0x155   : > { %v785_v20 = vpop.trf.xlu0 }
 0x156   : > { %v789_v21 = vunpack.i.h.bf16 %v785_v20  ;;  %v786_v22 = vunpack.i.l.bf16 %v785_v20  ;;  %v535_v20 = vrot.slane %v533_v18, 2 }
 0x158   : > { %v484_v23 = vpack.c.bf16 %v789_v21, %v789_v21  ;;  %v468_v24 = vpack.c.bf16 %v786_v22, %v786_v22 }
 0x15a   : > { %517 = vst.msk [vmem:[%s1117_s15 + $0x40] sm:$0xf] %vm500_vm2, %v484_v23  ;;  %v538_v23 = vsel %vm335_vm0, %v533_v18, %v535_v20 }
 0x15b   : > { %501 = vst.msk [vmem:[%s1117_s15] sm:$0xf] %vm500_vm2, %v468_v24 }
 0x15c   : > { %540 = vst [vmem:[%s301_s24] sm:$0xf] %v538_v23 }
 0x15d   : > { %v790_v25 = vpop.trf.xlu0 }
 0x15e   : > { %v794_v26 = vunpack.i.h.bf16 %v790_v25  ;;  %v791_v27 = vunpack.i.l.bf16 %v790_v25 }
 0x160   : > { %v485_v28 = vpack.c.bf16 %v794_v26, %v794_v26  ;;  %v469_v29 = vpack.c.bf16 %v791_v27, %v791_v27 }
 0x162   : > { %518 = vst.msk [vmem:[%s1117_s15 + $0x44] sm:$0xf] %vm500_vm2, %v485_v28 }
 0x163   : > { %502 = vst.msk [vmem:[%s1117_s15 + $0x4] sm:$0xf] %vm500_vm2, %v469_v29 }
 0x165   : > { %v795_v30 = vpop.trf.xlu0 }
 0x166   : > { %v799_v31 = vunpack.i.h.bf16 %v795_v30  ;;  %v796_v32 = vunpack.i.l.bf16 %v795_v30 }
 0x168   : > { %v486_v33 = vpack.c.bf16 %v799_v31, %v799_v31  ;;  %v470_v34 = vpack.c.bf16 %v796_v32, %v796_v32 }
 0x16a   : > { %519 = vst.msk [vmem:[%s1117_s15 + $0x48] sm:$0xf] %vm500_vm2, %v486_v33 }
 0x16b   : > { %503 = vst.msk [vmem:[%s1117_s15 + $0x8] sm:$0xf] %vm500_vm2, %v470_v34 }
 0x16d   : > { %v800_v35 = vpop.trf.xlu0 }
 0x16e   : > { %v804_v36 = vunpack.i.h.bf16 %v800_v35  ;;  %v801_v37 = vunpack.i.l.bf16 %v800_v35 }
 0x170   : > { %v487_v38 = vpack.c.bf16 %v804_v36, %v804_v36  ;;  %v471_v39 = vpack.c.bf16 %v801_v37, %v801_v37 }
 0x172   : > { %520 = vst.msk [vmem:[%s1117_s15 + $0x4c] sm:$0xf] %vm500_vm2, %v487_v38 }
 0x173   : > { %504 = vst.msk [vmem:[%s1117_s15 + $0xc] sm:$0xf] %vm500_vm2, %v471_v39 }
 0x175   : > { %v805_v40 = vpop.trf.xlu0 }
 0x176   : > { %v809_v41 = vunpack.i.h.bf16 %v805_v40  ;;  %v806_v42 = vunpack.i.l.bf16 %v805_v40 }
 0x178   : > { %v488_v43 = vpack.c.bf16 %v809_v41, %v809_v41  ;;  %v472_v44 = vpack.c.bf16 %v806_v42, %v806_v42 }
 0x17a   : > { %521 = vst.msk [vmem:[%s1117_s15 + $0x50] sm:$0xf] %vm500_vm2, %v488_v43 }
 0x17b   : > { %505 = vst.msk [vmem:[%s1117_s15 + $0x10] sm:$0xf] %vm500_vm2, %v472_v44 }
 0x17d   : > { %v810_v45 = vpop.trf.xlu0 }
 0x17e   : > { %v814_v46 = vunpack.i.h.bf16 %v810_v45  ;;  %v811_v47 = vunpack.i.l.bf16 %v810_v45 }
 0x180   : > { %v489_v48 = vpack.c.bf16 %v814_v46, %v814_v46  ;;  %v473_v49 = vpack.c.bf16 %v811_v47, %v811_v47 }
 0x182   : > { %522 = vst.msk [vmem:[%s1117_s15 + $0x54] sm:$0xf] %vm500_vm2, %v489_v48 }
 0x183   : > { %506 = vst.msk [vmem:[%s1117_s15 + $0x14] sm:$0xf] %vm500_vm2, %v473_v49 }
 0x185   : > { %v815_v50 = vpop.trf.xlu0 }
 0x186   : > { %v819_v51 = vunpack.i.h.bf16 %v815_v50  ;;  %v816_v52 = vunpack.i.l.bf16 %v815_v50 }
 0x188   : > { %v490_v53 = vpack.c.bf16 %v819_v51, %v819_v51  ;;  %v474_v54 = vpack.c.bf16 %v816_v52, %v816_v52 }
 0x18a   : > { %523 = vst.msk [vmem:[%s1117_s15 + $0x58] sm:$0xf] %vm500_vm2, %v490_v53 }
 0x18b   : > { %507 = vst.msk [vmem:[%s1117_s15 + $0x18] sm:$0xf] %vm500_vm2, %v474_v54 }
 0x18d   : > { %v820_v55 = vpop.trf.xlu0 }
 0x18e   : > { %v824_v56 = vunpack.i.h.bf16 %v820_v55  ;;  %v821_v57 = vunpack.i.l.bf16 %v820_v55 }
 0x190   : > { %v491_v58 = vpack.c.bf16 %v824_v56, %v824_v56  ;;  %v475_v59 = vpack.c.bf16 %v821_v57, %v821_v57 }
 0x192   : > { %524 = vst.msk [vmem:[%s1117_s15 + $0x5c] sm:$0xf] %vm500_vm2, %v491_v58 }
 0x193   : > { %508 = vst.msk [vmem:[%s1117_s15 + $0x1c] sm:$0xf] %vm500_vm2, %v475_v59 }
 0x195   : > { %v825_v60 = vpop.trf.xlu0 }
 0x196   : > { %v829_v61 = vunpack.i.h.bf16 %v825_v60  ;;  %v826_v62 = vunpack.i.l.bf16 %v825_v60 }
 0x198   : > { %v492_v63 = vpack.c.bf16 %v829_v61, %v829_v61  ;;  %v476_v0 = vpack.c.bf16 %v826_v62, %v826_v62 }
 0x19a   : > { %525 = vst.msk [vmem:[%s1117_s15 + $0x60] sm:$0xf] %vm500_vm2, %v492_v63 }
 0x19b   : > { %509 = vst.msk [vmem:[%s1117_s15 + $0x20] sm:$0xf] %vm500_vm2, %v476_v0 }
 0x19d   : > { %v830_v1 = vpop.trf.xlu0 }
 0x19e   : > { %v834_v2 = vunpack.i.h.bf16 %v830_v1  ;;  %v831_v3 = vunpack.i.l.bf16 %v830_v1 }
 0x1a0   : > { %v493_v4 = vpack.c.bf16 %v834_v2, %v834_v2  ;;  %v477_v5 = vpack.c.bf16 %v831_v3, %v831_v3 }
 0x1a2   : > { %526 = vst.msk [vmem:[%s1117_s15 + $0x64] sm:$0xf] %vm500_vm2, %v493_v4 }
 0x1a3   : > { %510 = vst.msk [vmem:[%s1117_s15 + $0x24] sm:$0xf] %vm500_vm2, %v477_v5 }
 0x1a5   : > { %v835_v8 = vpop.trf.xlu0 }
 0x1a6   : > { %v839_v9 = vunpack.i.h.bf16 %v835_v8  ;;  %v836_v10 = vunpack.i.l.bf16 %v835_v8 }
 0x1a8   : > { %v494_v11 = vpack.c.bf16 %v839_v9, %v839_v9  ;;  %v478_v12 = vpack.c.bf16 %v836_v10, %v836_v10 }
 0x1aa   : > { %527 = vst.msk [vmem:[%s1117_s15 + $0x68] sm:$0xf] %vm500_vm2, %v494_v11 }
 0x1ab   : > { %511 = vst.msk [vmem:[%s1117_s15 + $0x28] sm:$0xf] %vm500_vm2, %v478_v12 }
 0x1ad   : > { %v840_v19 = vpop.trf.xlu0 }
 0x1ae   : > { %v844_v21 = vunpack.i.h.bf16 %v840_v19  ;;  %v841_v22 = vunpack.i.l.bf16 %v840_v19 }
 0x1b0   : > { %v495_v24 = vpack.c.bf16 %v844_v21, %v844_v21  ;;  %v479_v25 = vpack.c.bf16 %v841_v22, %v841_v22 }
 0x1b1   : > { %923 = shalt.err (!%p920_p0)
}
 0x1b2   : > { %720 = dma.vmem_to_hbm [thread:$0]  (%p1067_p9), %s571_s18, 64, %s573_s19, %s551_s20   ;;  %528 = vst.msk [vmem:[%s1117_s15 + $0x6c] sm:$0xf] %vm500_vm2, %v495_v24 }
 0x1b3   : > { %512 = vst.msk [vmem:[%s1117_s15 + $0x2c] sm:$0xf] %vm500_vm2, %v479_v25 }
 0x1b5   : > { %v845_v26 = vpop.trf.xlu0 }
 0x1b6   : > { %v849_v27 = vunpack.i.h.bf16 %v845_v26  ;;  %v846_v28 = vunpack.i.l.bf16 %v845_v26 }
 0x1b8   : > { %v496_v29 = vpack.c.bf16 %v849_v27, %v849_v27  ;;  %v480_v30 = vpack.c.bf16 %v846_v28, %v846_v28 }
 0x1ba   : > { %529 = vst.msk [vmem:[%s1117_s15 + $0x70] sm:$0xf] %vm500_vm2, %v496_v29 }
 0x1bb   : > { %513 = vst.msk [vmem:[%s1117_s15 + $0x30] sm:$0xf] %vm500_vm2, %v480_v30 }
 0x1bd   : > { %v850_v31 = vpop.trf.xlu0 }
 0x1be   : > { %v854_v32 = vunpack.i.h.bf16 %v850_v31  ;;  %v851_v33 = vunpack.i.l.bf16 %v850_v31 }
 0x1c0   : > { %v497_v34 = vpack.c.bf16 %v854_v32, %v854_v32  ;;  %v481_v35 = vpack.c.bf16 %v851_v33, %v851_v33 }
 0x1c2   : > { %530 = vst.msk [vmem:[%s1117_s15 + $0x74] sm:$0xf] %vm500_vm2, %v497_v34 }
 0x1c3   : > { %514 = vst.msk [vmem:[%s1117_s15 + $0x34] sm:$0xf] %vm500_vm2, %v481_v35 }
 0x1c5   : > { %v855_v36 = vpop.trf.xlu0 }
 0x1c6   : > { %v859_v37 = vunpack.i.h.bf16 %v855_v36  ;;  %v856_v38 = vunpack.i.l.bf16 %v855_v36 }
 0x1c8   : > { %v498_v39 = vpack.c.bf16 %v859_v37, %v859_v37  ;;  %v482_v40 = vpack.c.bf16 %v856_v38, %v856_v38 }
 0x1ca   : > { %531 = vst.msk [vmem:[%s1117_s15 + $0x78] sm:$0xf] %vm500_vm2, %v498_v39 }
 0x1cb   : > { %515 = vst.msk [vmem:[%s1117_s15 + $0x38] sm:$0xf] %vm500_vm2, %v482_v40 }
 0x1cd   : > { %v860_v41 = vpop.trf.xlu0 }
 0x1ce   : > { %v864_v42 = vunpack.i.h.bf16 %v860_v41  ;;  %v861_v43 = vunpack.i.l.bf16 %v860_v41 }
 0x1d0   : > { %v499_v44 = vpack.c.bf16 %v864_v42, %v864_v42  ;;  %v483_v45 = vpack.c.bf16 %v861_v43, %v861_v43 }
 0x1d2   : > { %532 = vst.msk [vmem:[%s1117_s15 + $0x7c] sm:$0xf] %vm500_vm2, %v499_v44 }
 0x1d3   : > { %516 = vst.msk [vmem:[%s1117_s15 + $0x3c] sm:$0xf] %vm500_vm2, %v483_v45 }
 0x1d4 PF: > { %s596_s10 = sand.u32 1, %s958_s21   ;;  %p727_p9 = pnand %p697_p12, %p1074_p11 }
 0x1d5   : > { %s597_s30 = scalar_lea.sflag [#allocation4], %s596_s10 }
 0x1d6   : > { %p728_p1 = pneg %p727_p9 }
 0x1d8   : > { %953 = dma.done.wait (%p728_p1), %s597_s30, 64  }
 0x1d9   : > { %955 = vsyncadd (%p728_p1), %s597_s30, 4294967232  ;;  %s23_s26 = sadd.s32 1, %s978_s26   ;;  %s1234_s21 = smov %s962_s22 }
 0x1da   : > { %p20_p2 = scmp.ge.s32.totalorder %s23_s26, 4   ;;  %s1235_s22 = smov %s966_s23 }
 0x1db   : > { %s1236_s23 = smov %s1072_s11  ;;  %s1237_s24 = smov %s974_s25 }
 0x1dc   : > { %s1238_s25 = smov %s1240_s29  ;;  %22 = sbr.rel (!%p20_p2) target bundleno = 6 (0x6), region = 97 }
 0x1e1   :  { %603 = vsyncpa [#allocation3], 1 }
 0x1e2   :  { %605 = vsyncpa [#allocation3 + $0x1], 1 }
 0x1e3   :  { %606 = vsyncpa [#allocation4], 1 }
 0x1e4   :  { %608 = vsyncpa [#allocation4 + $0x1], 1 }

</bundles_post_ra>
